<compile_context>
chip_gen: v7x
topology: tpu7x:2x2x1
jax: 0.10.0
libtpu: 0.0.40
codegen_flags: <defaults>
</compile_context>

<pallas_src>
import functools

import jax
import jax.numpy as jnp
from jax import lax
from jax.experimental import pallas as pl
from jax.experimental.pallas import tpu as pltpu


# ----------------------------------------------------------------------------
# Small helpers
# ----------------------------------------------------------------------------
def _round_up(x, m):
    return ((x + m - 1) // m) * m


def _pad_rows(x, target_rows):
    pad = target_rows - x.shape[0]
    if pad == 0:        # only pad when not already tile-aligned (no HBM round-trip)
        return x
    return jnp.pad(x, ((0, pad), (0, 0)))


def _tile_rows(B, t_default, mult=16):
    """Row tile (multiple of `mult` for bf16 sublane packing) + padded row count.

    Prefers >=2 tiles along the (parallel) batch axis so v7x's second
    TensorCore is not idle when the batch allows it."""
    B_al = _round_up(max(B, mult), mult)
    t = min(t_default, B_al)
    if B_al // t < 2 and B_al >= 2 * mult:
        t = max(mult, _round_up(B_al // 2, mult))
    B_pad = _round_up(B_al, t)
    return t, B_pad


def _tile_cols(B, t_default=256):
    """Score-column tile: pad to a multiple of 128 (lane-dense output slab),
    pick tn as a divisor of the padded size (256 fills v6e/v7x MXUs, 128 is the
    v5e-native width)."""
    B_pad = _round_up(max(B, 128), 128)
    t = t_default if (t_default and B_pad % t_default == 0) else 128
    t = min(t, B_pad)
    return t, B_pad


@functools.lru_cache(maxsize=None)
def _vmem_limit_bytes():
    """Per-generation scoped-VMEM ceiling (v5e/v6e: 128 MiB phys, v7x: 64 MiB)."""
    cap = 64 * 1024 * 1024          # conservative fallback (v7x physical)
    try:
        cap = int(pltpu.get_tpu_info().vmem_capacity_bytes)
    except Exception:
        pass
    return int(min(cap * 3 // 4, 96 * 1024 * 1024))


def _resident_spec(block_shape):
    """BlockSpec for a grid-invariant (resident) operand: constant index_map and
    single-buffered (double-buffering an operand that is never re-fetched only
    wastes VMEM)."""
    zeros = lambda *args: (0,) * len(block_shape)
    try:
        return pl.BlockSpec(block_shape, zeros, pipeline_mode=pl.Buffered(1))
    except TypeError:   # pipeline_mode unavailable -> default double buffering
        return pl.BlockSpec(block_shape, zeros)


# ----------------------------------------------------------------------------
# Kernel 1: encoder tile:  emb = normalize(x @ W + b)
#   bf16 MXU operands (cast in the wrapper), f32 accumulate, f32 epilogue.
# ----------------------------------------------------------------------------
def _encode_kernel(x_ref, w_ref, b_ref, o_ref):
    h = jnp.dot(x_ref[...], w_ref[...],
                preferred_element_type=jnp.float32) + b_ref[...]
    inv = lax.rsqrt(jnp.sum(h * h, axis=-1, keepdims=True) + 1e-12)
    o_ref[...] = (h * inv).astype(o_ref.dtype)


def _encode_call(x_p, w, b, *, tile, out_dtype):
    """x_p already padded to a multiple of `tile` rows and cast to bf16."""
    B_pad, Din = x_p.shape
    D = w.shape[1]
    grid = (B_pad // tile,)
    return pl.pallas_call(
        _encode_kernel,
        out_shape=jax.ShapeDtypeStruct((B_pad, D), out_dtype),
        grid_spec=pltpu.PrefetchScalarGridSpec(
            num_scalar_prefetch=0,
            grid=grid,
            in_specs=[
                pl.BlockSpec((tile, Din), lambda i: (i, 0)),   # streamed batch tile
                _resident_spec((Din, D)),                      # resident weight (bf16)
                _resident_spec((1, D)),                        # resident bias (f32)
            ],
            out_specs=pl.BlockSpec((tile, D), lambda i: (i, 0)),
        ),
        compiler_params=pltpu.CompilerParams(
            dimension_semantics=("parallel",),
            vmem_limit_bytes=_vmem_limit_bytes()),
        cost_estimate=pl.CostEstimate(
            flops=2 * B_pad * Din * D,
            transcendentals=B_pad,
            bytes_accessed=(2 * B_pad * Din + 2 * Din * D + 4 * D
                            + jnp.dtype(out_dtype).itemsize * B_pad * D)),
    )(x_p, w, b)


def encode(x, w, b, *, tm=256, out_dtype=jnp.bfloat16):
    """x: [B, Din], w: [Din, D], b: [1, D] -> [B, D] L2-normalized (bf16)."""
    B = x.shape[0]
    tile, B_pad = _tile_rows(B, tm, 16)
    x_p = _pad_rows(x.astype(jnp.bfloat16), B_pad)
    out = _encode_call(x_p, w.astype(jnp.bfloat16), b.astype(jnp.float32),
                       tile=tile, out_dtype=out_dtype)
    return out[:B]


# ----------------------------------------------------------------------------
# Kernel 2: standalone GLAP score:  100 * (a @ t.T)
#   dot_general contracting the last dims of both operands (no transposed
#   staging copy of the text tile); lane-dense padded output, sliced in wrapper.
# ----------------------------------------------------------------------------
def _score_kernel(a_ref, t_ref, o_ref):
    s = lax.dot_general(
        a_ref[...], t_ref[...],
        dimension_numbers=(((1,), (1,)), ((), ())),
        preferred_element_type=jnp.float32)
    o_ref[...] = (100.0 * s).astype(o_ref.dtype)


def score(audio_emb, text_emb, *, tm=256, tn=256):
    """audio_emb: [Ba, D], text_emb: [Bt, D] -> [Ba, Bt] = 100 * (a @ t.T)."""
    Ba, D = audio_emb.shape
    Bt, _ = text_emb.shape
    tm, Ba_pad = _tile_rows(Ba, tm, 16)
    tn, Bt_pad = _tile_cols(Bt, tn)
    a_p = _pad_rows(audio_emb.astype(jnp.bfloat16), Ba_pad)
    t_p = _pad_rows(text_emb.astype(jnp.bfloat16), Bt_pad)
    grid = (Ba_pad // tm, Bt_pad // tn)
    out = pl.pallas_call(
        _score_kernel,
        out_shape=jax.ShapeDtypeStruct((Ba_pad, Bt_pad), jnp.float32),
        grid_spec=pltpu.PrefetchScalarGridSpec(
            num_scalar_prefetch=0,
            grid=grid,
            in_specs=[
                pl.BlockSpec((tm, D), lambda i, j: (i, 0)),
                pl.BlockSpec((tn, D), lambda i, j: (j, 0)),
            ],
            out_specs=pl.BlockSpec((tm, tn), lambda i, j: (i, j)),
        ),
        compiler_params=pltpu.CompilerParams(
            dimension_semantics=("parallel", "parallel"),
            vmem_limit_bytes=_vmem_limit_bytes()),
        cost_estimate=pl.CostEstimate(
            flops=2 * Ba_pad * Bt_pad * D,
            transcendentals=0,
            bytes_accessed=(2 * (Ba_pad * D + Bt_pad * D)
                            + 4 * Ba_pad * Bt_pad)),
    )(a_p, t_p)
    return out[:Ba, :Bt]


# ----------------------------------------------------------------------------
# Kernel 3 (hot path): fused score_forward.
#   Text is pre-encoded once (bf16 embeddings).  The fused kernel encodes one
#   audio row-tile (cached in VMEM scratch, recomputed only when the text-tile
#   index resets) and streams text embedding tiles through the score matmul.
#   The 100x score scale is folded into the audio normalization.
# ----------------------------------------------------------------------------
def _fused_score_kernel(xa_ref, wa_ref, ba_ref, temb_ref, o_ref, a_cache):
    @pl.when(pl.program_id(1) == 0)
    def _():
        ha = jnp.dot(xa_ref[...], wa_ref[...],
                     preferred_element_type=jnp.float32) + ba_ref[...]
        inv = lax.rsqrt(jnp.sum(ha * ha, axis=-1, keepdims=True) + 1e-12)
        a_cache[...] = (ha * (100.0 * inv)).astype(a_cache.dtype)   # fold 100x

    # Contract last dims of both operands -> no transposed copy of the text tile.
    # TODO(synk): keep this final contraction in f32 if exact ranking of
    # near-tied scores vs an f32 reference ever matters.
    s = lax.dot_general(
        a_cache[...], temb_ref[...],
        dimension_numbers=(((1,), (1,)), ((), ())),
        preferred_element_type=jnp.float32)
    o_ref[...] = s.astype(o_ref.dtype)


def score_forward_fused(audio_feats, text_feats, params, *, tm=256, tn=256):
    """GLAPInference.score_forward: [Ba, Bt] = 100 * A_norm @ T_norm^T."""
    Ba, Din_a = audio_feats.shape
    Bt, Din_t = text_feats.shape
    wa = params["audio_w"].astype(jnp.bfloat16)
    ba = params["audio_b"].astype(jnp.float32)
    wt = params["text_w"].astype(jnp.bfloat16)
    bt = params["text_b"].astype(jnp.float32)
    D = wa.shape[1]

    tm, Ba_pad = _tile_rows(Ba, tm, 16)
    tn, Bt_pad = _tile_cols(Bt, tn)

    # Pass 1: text encoded exactly once -> bf16 [Bt_pad, D] embeddings.
    xt_p = _pad_rows(text_feats.astype(jnp.bfloat16), Bt_pad)
    t_emb = _encode_call(xt_p, wt, bt, tile=tn, out_dtype=jnp.bfloat16)

    # Pass 2: fused audio encode + score (audio GEMM runs once per row tile).
    xa_p = _pad_rows(audio_feats.astype(jnp.bfloat16), Ba_pad)
    grid = (Ba_pad // tm, Bt_pad // tn)
    out = pl.pallas_call(
        _fused_score_kernel,
        out_shape=jax.ShapeDtypeStruct((Ba_pad, Bt_pad), jnp.float32),
        grid_spec=pltpu.PrefetchScalarGridSpec(
            num_scalar_prefetch=0,
            grid=grid,
            in_specs=[
                pl.BlockSpec((tm, Din_a), lambda i, j: (i, 0)),  # audio tile (same block across j)
                _resident_spec((Din_a, D)),                      # resident audio weight
                _resident_spec((1, D)),                          # resident audio bias
                pl.BlockSpec((tn, D), lambda i, j: (j, 0)),      # streamed text embeddings
            ],
            out_specs=pl.BlockSpec((tm, tn), lambda i, j: (i, j)),
            scratch_shapes=[pltpu.VMEM((tm, D), jnp.bfloat16)],  # cached encoded audio tile
        ),
        compiler_params=pltpu.CompilerParams(
            # axis 0 parallel (megacore sharding), axis 1 arbitrary (scratch carry)
            dimension_semantics=("parallel", "arbitrary"),
            vmem_limit_bytes=_vmem_limit_bytes()),
        cost_estimate=pl.CostEstimate(
            flops=2 * Ba_pad * Din_a * D + 2 * Ba_pad * Bt_pad * D,
            transcendentals=Ba_pad,
            bytes_accessed=(2 * (Ba_pad * Din_a + Din_a * D) + 4 * D
                            + 2 * (Ba_pad // tm) * Bt_pad * D
                            + 4 * Ba_pad * Bt_pad)),
    )(xa_p, wa, ba, t_emb)
    return out[:Ba, :Bt]


# ----------------------------------------------------------------------------
# GLAPInference equivalent (synthetic model_impl: linear proj + L2 norm)
# ----------------------------------------------------------------------------
class GLAPInferenceJAX:
    # TODO(synk): the real model_impl is an arbitrary pretrained checkpoint
    # (torch.hub download); a linear-projection + L2-normalize encoder per
    # modality stands in for it here.
    def __init__(self, params):
        self.params = params

    def encode_audio(self, audio_feats):
        return encode(audio_feats, self.params["audio_w"], self.params["audio_b"])

    def encode_text(self, text_feats):
        return encode(text_feats, self.params["text_w"], self.params["text_b"])

    def forward(self, audio_feats, text_feats):
        return self.encode_audio(audio_feats), self.encode_text(text_feats)

    __call__ = forward

    def score(self, audio_emb, text_emb):
        return score(audio_emb, text_emb)

    def score_forward(self, audio_feats, text_feats):
        # hot path: text pre-encode + one fused audio-encode/score kernel
        return score_forward_fused(audio_feats, text_feats, self.params)


def _reference_score_forward(audio_feats, text_feats, params):
    """Pure-JAX f32 reference (module semantics) for correctness check."""
    def enc(x, w, b):
        h = x @ w + b
        return h * lax.rsqrt(jnp.sum(h * h, axis=-1, keepdims=True) + 1e-12)
    a = enc(audio_feats, params["audio_w"], params["audio_b"])
    t = enc(text_feats, params["text_w"], params["text_b"])
    return 100.0 * (a @ t.T)


if __name__ == "__main__":
    key = jax.random.PRNGKey(0)
    k1, k2, k3, k4, k5, k6 = jax.random.split(key, 6)

    # Small shapes: audio batch 8, text batch 8, feature dims 128, embed 128.
    B_AUDIO, B_TEXT = 8, 8
    D_AUDIO_IN, D_TEXT_IN, D_EMB = 128, 128, 128

    params = {
        "audio_w": jax.random.normal(k1, (D_AUDIO_IN, D_EMB), jnp.float32) * 0.05,
        "audio_b": jax.random.normal(k2, (1, D_EMB), jnp.float32) * 0.01,
        "text_w": jax.random.normal(k3, (D_TEXT_IN, D_EMB), jnp.float32) * 0.05,
        "text_b": jax.random.normal(k4, (1, D_EMB), jnp.float32) * 0.01,
    }

    audio_feats = jax.random.normal(k5, (B_AUDIO, D_AUDIO_IN), jnp.float32)
    text_feats = jax.random.normal(k6, (B_TEXT, D_TEXT_IN), jnp.float32)

    model = GLAPInferenceJAX(params)

    # fused hot path
    scores_fused = jax.block_until_ready(model.score_forward(audio_feats, text_feats))
    # unfused path (forward -> score), exercising the encode/score kernels
    a_emb, t_emb = model.forward(audio_feats, text_feats)
    scores_unfused = jax.block_until_ready(model.score(a_emb, t_emb))

    ref = _reference_score_forward(audio_feats, text_feats, params)

    assert scores_fused.shape == (B_AUDIO, B_TEXT)
    assert scores_unfused.shape == (B_AUDIO, B_TEXT)
    # bf16 MXU operands / bf16 embeddings -> loosened absolute tolerance
    # (scores are scaled by 100).
    assert jnp.allclose(scores_fused, ref, atol=0.5, rtol=5e-2), \
        "fused score_forward mismatch vs reference"
    assert jnp.allclose(scores_unfused, ref, atol=0.5, rtol=5e-2), \
        "unfused forward+score mismatch vs reference"
    assert jnp.allclose(scores_fused, scores_unfused, atol=0.3, rtol=5e-2), \
        "fused vs unfused mismatch"

    print("KERNEL_OK")
</pallas_src>

<mosaic_0001>
module attributes {stable_mosaic.version = 11 : i64} {
  func.func @_encode_kernel(%arg0: i32, %arg1: memref<128x128xbf16, #tpu.memory_space<vmem>>, %arg2: memref<128x128xbf16, #tpu.memory_space<vmem>>, %arg3: memref<1x128xf32, #tpu.memory_space<vmem>>, %arg4: memref<128x128xbf16, #tpu.memory_space<vmem>>) attributes {dimension_semantics = [#tpu.dimension_semantics<parallel>], iteration_bounds = array<i64: 1>, scalar_prefetch = 0 : i64, scratch_operands = 0 : i64, tpu.core_type = #tpu.core_type<tc>, window_params = [{transform_indices = @transform_0, window_bounds = array<i64: 128, 128>}, {pipeline_mode = #tpu.pipeline_mode<synchronous>, transform_indices = @transform_1, window_bounds = array<i64: 128, 128>}, {pipeline_mode = #tpu.pipeline_mode<synchronous>, transform_indices = @transform_2, window_bounds = array<i64: 1, 128>}, {transform_indices = @transform_3, window_bounds = array<i64: 128, 128>}]} {
    %c0 = arith.constant 0 : index
    %c0_0 = arith.constant 0 : index
    %0 = vector.load %arg1[%c0, %c0_0] : memref<128x128xbf16, #tpu.memory_space<vmem>>, vector<128x128xbf16>
    %c0_1 = arith.constant 0 : index
    %c0_2 = arith.constant 0 : index
    %1 = vector.load %arg2[%c0_1, %c0_2] : memref<128x128xbf16, #tpu.memory_space<vmem>>, vector<128x128xbf16>
    %cst = arith.constant dense<0.000000e+00> : vector<128x128xf32>
    %2 = tpu.matmul %0, %1, %cst {dimension_numbers = #tpu.dot_dimension_numbers<[1], [0], [0], [1], [0, 0, 1, 1], [], []>} : vector<128x128xbf16>, vector<128x128xbf16>, vector<128x128xf32> -> vector<128x128xf32>
    %c0_3 = arith.constant 0 : index
    %c0_4 = arith.constant 0 : index
    %3 = vector.load %arg3[%c0_3, %c0_4] : memref<1x128xf32, #tpu.memory_space<vmem>>, vector<1x128xf32>
    %4 = vector.broadcast %3 : vector<1x128xf32> to vector<128x128xf32>
    %5 = arith.addf %2, %4 : vector<128x128xf32>
    %6 = arith.mulf %5, %5 : vector<128x128xf32>
    %cst_5 = arith.constant dense<0.000000e+00> : vector<128xf32>
    %7 = vector.multi_reduction <add>, %6, %cst_5 [1] : vector<128x128xf32> to vector<128xf32>
    %8 = vector.shape_cast %7 : vector<128xf32> to vector<128x1xf32>
    %cst_6 = arith.constant 9.99999996E-13 : f32
    %9 = vector.broadcast %cst_6 : f32 to vector<128x1xf32>
    %10 = arith.addf %8, %9 : vector<128x1xf32>
    %11 = math.rsqrt %10 : vector<128x1xf32>
    %12 = vector.broadcast %11 : vector<128x1xf32> to vector<128x128xf32>
    %13 = arith.mulf %5, %12 : vector<128x128xf32>
    %14 = arith.truncf %13 : vector<128x128xf32> to vector<128x128xbf16>
    %c0_7 = arith.constant 0 : index
    %c0_8 = arith.constant 0 : index
    %15 = vector.load %arg4[%c0_7, %c0_8] : memref<128x128xbf16, #tpu.memory_space<vmem>>, vector<128x128xbf16>
    tpu.vector_store %arg4[%c0_7, %c0_8], %14 {strides = array<i32>} : memref<128x128xbf16, #tpu.memory_space<vmem>>, vector<128x128xbf16>,
    return
  }
  func.func @transform_0(%arg0: i32) -> (i32, i32) {
    %c0_i32 = arith.constant 0 : i32
    %c0_i32_0 = arith.constant 0 : i32
    return %arg0, %c0_i32 : i32, i32
  }
  func.func @transform_1(%arg0: i32) -> (i32, i32) {
    %c0_i32 = arith.constant 0 : i32
    %c0_i32_0 = arith.constant 0 : i32
    %c0_i32_1 = arith.constant 0 : i32
    return %c0_i32, %c0_i32_0 : i32, i32
  }
  func.func @transform_2(%arg0: i32) -> (i32, i32) {
    %c0_i32 = arith.constant 0 : i32
    %c0_i32_0 = arith.constant 0 : i32
    %c0_i32_1 = arith.constant 0 : i32
    return %c0_i32, %c0_i32_0 : i32, i32
  }
  func.func @transform_3(%arg0: i32) -> (i32, i32) {
    %c0_i32 = arith.constant 0 : i32
    %c0_i32_0 = arith.constant 0 : i32
    return %arg0, %c0_i32 : i32, i32
  }
}

</mosaic_0001>

<bundles_post_ra>
// kernel: tpu_custom_call.1
= control target key start
LH: loop header
LB: loop body
LE: loop exit
PB: predicated region body
PF: predicated region fallthrough
CT: control target
= control target key end

     0   :  { %8 = vsyncpa [#allocation3], 0  ;;  %s908_s0 = inlined_call_operand.hbm [shape: bf16[128,128], index: 0, kind: input, shape index: {}]   ;;  %s909_s1 = inlined_call_operand.hbm [shape: bf16[128,128], index: 1, kind: input, shape index: {}]   ;;  %s910_s2 = inlined_call_operand.vmem [shape: f32[1,128], index: 2, kind: input, shape index: {}]   ;;  %s911_s3 = inlined_call_operand.hbm [shape: bf16[128,128], index: 3, kind: output, shape index: {}]  }
   0x1   :  { %9 = vsyncpa [#allocation6], 0 }
   0x2   :  { %10 = vsyncpa [#allocation4], 0  ;;  %s755_s12 = smov [#allocation2]   ;;  %s683_s16 = scalar_lea.hbm %s908_s0, 1024 }
   0x3   :  { %s16_s13 = sshll.u32 %s755_s12, 4  ;;  %p684_p0 = scmp.ne.s32.totalorder %s908_s0, %s683_s16  ;;  %s17_s13 = int_to_ptr.vmem [resolvable:$true] %s16_s13 }
   0x4   :  { %p687_p1 = scmp.lt.u32.totalorder %s683_s16, %s908_s0 }
   0x6   :  { %p689_p2 = pnand %p687_p1, %p684_p0 }
   0x8   :  { %692 = shalt.err (!%p689_p2)
}
   0x9   :  { %s693_s21 = scalar_lea.vmem %s17_s13, 1024  ;;  %p698_p4 = scmp.lt.s32.totalorder %s17_s13, %s17_s13 }
   0xa   :  { %p694_p3 = scmp.ne.s32.totalorder %s17_s13, %s693_s21  ;;  %p699_p5 = scmp.lt.s32.totalorder %s693_s21, %s693_s21 }
   0xc   :  { %p700_p6 = por %p699_p5, %p698_p4 }
   0xe   :  { %p701_p7 = pnand %p700_p6, %p694_p3 }
  0x10   :  { %704 = shalt.err (!%p701_p7)
}
  0x11   :  { %s756_s22 = smov 64   ;;  %s757_s23 = smov 4  }
  0x12   :  { %22 = dma.hbm_to_vmem [thread:$0]  %s908_s0, 1024, %s17_s13, [#allocation3], %s756_s22, %s756_s22, %s757_s23  }
  0x13   :  { %s758_s26 = smov [#allocation5]   ;;  %s705_s30 = scalar_lea.hbm %s909_s1, 1024 }
  0x14   :  { %s28_s27 = sshll.u32 %s758_s26, 4  ;;  %p706_p8 = scmp.ne.s32.totalorder %s909_s1, %s705_s30  ;;  %s29_s27 = int_to_ptr.vmem [resolvable:$true] %s28_s27 }
  0x15   :  { %p709_p9 = scmp.lt.u32.totalorder %s705_s30, %s909_s1 }
  0x17   :  { %p711_p10 = pnand %p709_p9, %p706_p8 }
  0x19   :  { %714 = shalt.err (!%p711_p10)
}
  0x1a   :  { %s715_s8 = scalar_lea.vmem %s29_s27, 1024  ;;  %p720_p12 = scmp.lt.s32.totalorder %s29_s27, %s29_s27 }
  0x1b   :  { %p716_p11 = scmp.ne.s32.totalorder %s29_s27, %s715_s8  ;;  %p721_p13 = scmp.lt.s32.totalorder %s715_s8, %s715_s8 }
  0x1d   :  { %p722_p0 = por %p721_p13, %p720_p12 }
  0x1f   :  { %p723_p1 = pnand %p722_p0, %p716_p11 }
  0x21   :  { %726 = shalt.err (!%p723_p1)
}
  0x22   :  { %34 = dma.hbm_to_vmem [thread:$0]  %s909_s1, 1024, %s29_s27, [#allocation6], %s756_s22, %s756_s22, %s757_s23  }
  0x23   :  { %749 = dma.done.wait [#allocation3], 1024  }
  0x24   :  { %750 = vsyncadd [#allocation3], 4294966272 }
  0x25   :  { %751 = dma.done.wait [#allocation6], 1024  }
  0x26   :  { %752 = vsyncadd [#allocation6], 4294966272  ;;  %v635_v0 = vld [vmem:[#allocation5] sm:$0xff]   ;;  %v636_v1 = vld [vmem:[#allocation5 + $0x8] sm:$0xff]  }
  0x27   :  { %582 = vmatprep.subr.bf16.mxu0 %v635_v0  ;;  %614 = vmatprep.subr.bf16.mxu1 %v635_v0  ;;  %v637_v2 = vld [vmem:[#allocation5 + $0x10] sm:$0xff]   ;;  %v638_v3 = vld [vmem:[#allocation5 + $0x18] sm:$0xff]   ;;  %v643_v4 = vld [vmem:[#allocation2] sm:$0xff]  }
  0x28   :  { %583 = vmatpush3.bf16.msra.mxu0 %v635_v0  ;;  %622 = vmatpush3.bf16.msra.mxu1 %v635_v0  ;;  %v644_v5 = vld [vmem:[#allocation2 + $0x20] sm:$0xff]   ;;  %v640_v7 = vld [vmem:[#allocation5 + $0x28] sm:$0xff]   ;;  %v641_v8 = vld [vmem:[#allocation5 + $0x30] sm:$0xff]  }
  0x29   :  { %584 = vmatprep.subr.bf16.mxu0 %v636_v1  ;;  %615 = vmatprep.subr.bf16.mxu1 %v636_v1  ;;  %v639_v6 = vld [vmem:[#allocation5 + $0x20] sm:$0xff]   ;;  %v642_v9 = vld [vmem:[#allocation5 + $0x38] sm:$0xff]   ;;  %v645_v10 = vld [vmem:[#allocation2 + $0x8] sm:$0xff]  }
  0x2a   :  { %598 = vmatprep.mubr.bf16.mxu0 %v643_v4  ;;  %606 = vmatprep.mubr.bf16.mxu1 %v644_v5  ;;  %v646_v11 = vld [vmem:[#allocation2 + $0x28] sm:$0xff]   ;;  %v647_v12 = vld [vmem:[#allocation2 + $0x10] sm:$0xff]   ;;  %v648_v14 = vld [vmem:[#allocation2 + $0x18] sm:$0xff]  }
  0x2b   :  { %v649_v13 = vld [vmem:[#allocation2 + $0x30] sm:$0xff]   ;;  %v650_v15 = vld [vmem:[#allocation2 + $0x38] sm:$0xff]   ;;  %v470_v16 = vld [vmem:[%s910_s2] ss:$0 sm:$0xff]  ;;  %s759_s2 = smov [#allocation7]  }
  0x2c   :  { %585 = vmatpush3.bf16.msra.mxu0 %v636_v1  ;;  %623 = vmatpush3.bf16.msra.mxu1 %v636_v1  ;;  %s457_s11 = sshll.u32 %s759_s2, 4  ;;  %s458_s11 = int_to_ptr.vmem [resolvable:$true] %s457_s11 }
  0x2d   :  { %586 = vmatprep.subr.bf16.mxu0 %v637_v2  ;;  %616 = vmatprep.subr.bf16.mxu1 %v637_v2  ;;  %s727_s12 = scalar_lea.vmem %s458_s11, 1024  ;;  %p732_p3 = scmp.lt.s32.totalorder %s458_s11, %s458_s11 }
  0x2e   :  { %p728_p2 = scmp.ne.s32.totalorder %s458_s11, %s727_s12  ;;  %p733_p4 = scmp.lt.s32.totalorder %s727_s12, %s727_s12 }
  0x30   :  { %587 = vmatpush3.bf16.msra.mxu0 %v637_v2  ;;  %624 = vmatpush3.bf16.msra.mxu1 %v637_v2  ;;  %p734_p5 = por %p733_p4, %p732_p3 }
  0x31   :  { %588 = vmatprep.subr.bf16.mxu0 %v638_v3  ;;  %617 = vmatprep.subr.bf16.mxu1 %v638_v3 }
  0x32   :  { %p735_p6 = pnand %p734_p5, %p728_p2 }
  0x34   :  { %589 = vmatpush3.bf16.msra.mxu0 %v638_v3  ;;  %625 = vmatpush3.bf16.msra.mxu1 %v638_v3 }
  0x35   :  { %590 = vmatprep.subr.bf16.mxu0 %v639_v6  ;;  %618 = vmatprep.subr.bf16.mxu1 %v639_v6 }
  0x38   :  { %591 = vmatpush3.bf16.msra.mxu0 %v639_v6  ;;  %626 = vmatpush3.bf16.msra.mxu1 %v639_v6 }
  0x39   :  { %592 = vmatprep.subr.bf16.mxu0 %v640_v7  ;;  %619 = vmatprep.subr.bf16.mxu1 %v640_v7 }
  0x3c   :  { %593 = vmatpush3.bf16.msra.mxu0 %v640_v7  ;;  %627 = vmatpush3.bf16.msra.mxu1 %v640_v7 }
  0x3d   :  { %594 = vmatprep.subr.bf16.mxu0 %v641_v8  ;;  %620 = vmatprep.subr.bf16.mxu1 %v641_v8 }
  0x40   :  { %595 = vmatpush3.bf16.msra.mxu0 %v641_v8  ;;  %628 = vmatpush3.bf16.msra.mxu1 %v641_v8 }
  0x41   :  { %596 = vmatprep.subr.bf16.mxu0 %v642_v9  ;;  %621 = vmatprep.subr.bf16.mxu1 %v642_v9 }
  0x44   :  { %597 = vmatpush3.bf16.msra.mxu0 %v642_v9  ;;  %629 = vmatpush3.bf16.msra.mxu1 %v642_v9 }
  0x47   :  { %599 = vmatmul.mubr.bf16.vlgmr.msra.gmra.mrb[0].mxu0 %v645_v10  ;;  %607 = vmatmul.mubr.bf16.vlgmr.msra.gmra.mrb[0].mxu1 %v646_v11 }
  0x48   :  { %602 = vmatprep.mubr.bf16.mxu0 %v647_v12  ;;  %610 = vmatprep.mubr.bf16.mxu1 %v649_v13 }
  0x4f   :  { %603 = vmatmul.mubr.bf16.gmra.mrb[4].mxu0 %v648_v14  ;;  %611 = vmatmul.mubr.bf16.gmra.mrb[4].mxu1 %v650_v15 }
 0x11a   :  { %v600_v17 = vpop.f32.mrb[0].mxu0  ;;  %v608_v18 = vpop.f32.mrb[0].mxu1 }
 0x11b   :  { %v813_v19 = vadd.f32 %v600_v17, %v470_v16  ;;  %v815_v20 = vadd.f32 %v608_v18, %v470_v16  ;;  %v213_v21 = vpop.f32.mrb[1].mxu0  ;;  %v245_v22 = vpop.f32.mrb[1].mxu1 }
 0x11c   :  { %v601_v23 = vpop.f32.mrb[2].mxu0  ;;  %v609_v24 = vpop.f32.mrb[2].mxu1  ;;  %v817_v25 = vadd.f32 %v470_v16, %v213_v21  ;;  %v825_v31 = vadd.f32 %v470_v16, %v245_v22 }
 0x11d   :  { %v819_v26 = vadd.f32 %v601_v23, %v470_v16  ;;  %v216_v27 = vpop.f32.mrb[3].mxu0  ;;  %v248_v28 = vpop.f32.mrb[3].mxu1  ;;  %v286_v29 = vmul.f32 %v815_v20, %v815_v20  ;;  %v278_v30 = vmul.f32 %v813_v19, %v813_v19  ;;  %v827_v32 = vadd.f32 %v609_v24, %v470_v16 }
 0x11e   :  { %v276_v34 = vmul.f32 %v817_v25, %v817_v25  ;;  %v833_v41 = vadd.f32 %v470_v16, %v216_v27  ;;  %v835_v42 = vadd.f32 %v470_v16, %v248_v28  ;;  %v284_v44 = vmul.f32 %v825_v31, %v825_v31 }
 0x11f   :  { %312 = vadd.xlane.f32.xlu0 %v286_v29  ;;  %296 = vadd.xlane.f32.xlu1 %v278_v30  ;;  %v279_v33 = vmul.f32 %v819_v26, %v819_v26  ;;  %v287_v43 = vmul.f32 %v827_v32, %v827_v32 }
 0x120   :  { %v285_v49 = vmul.f32 %v835_v42, %v835_v42  ;;  %v277_v50 = vmul.f32 %v833_v41, %v833_v41 }
 0x122   :  { %v604_v35 = vpop.f32.mrb[4].mxu0  ;;  %v612_v36 = vpop.f32.mrb[4].mxu1 }
 0x123   :  { %298 = vadd.xlane.f32.xlu1 %v279_v33  ;;  %292 = vadd.xlane.f32.xlu0 %v276_v34  ;;  %v229_v37 = vpop.f32.mrb[5].mxu0  ;;  %v261_v38 = vpop.f32.mrb[5].mxu1  ;;  %v841_v47 = vadd.f32 %v604_v35, %v470_v16  ;;  %v865_v59 = vadd.f32 %v612_v36, %v470_v16 }
 0x124   :  { %v605_v39 = vpop.f32.mrb[6].mxu0  ;;  %v613_v40 = vpop.f32.mrb[6].mxu1  ;;  %v849_v51 = vadd.f32 %v470_v16, %v229_v37  ;;  %v857_v55 = vadd.f32 %v470_v16, %v261_v38 }
 0x125   :  { %v232_v45 = vpop.f32.mrb[7].mxu0  ;;  %v264_v46 = vpop.f32.mrb[7].mxu1  ;;  %v843_v48 = vadd.f32 %v605_v39, %v470_v16  ;;  %v282_v54 = vmul.f32 %v841_v47, %v841_v47  ;;  %v867_v60 = vadd.f32 %v613_v40, %v470_v16  ;;  %v290_v0 = vmul.f32 %v865_v59, %v865_v59 }
 0x126   :  { %v851_v52 = vadd.f32 %v470_v16, %v232_v45  ;;  %v859_v56 = vadd.f32 %v470_v16, %v264_v46  ;;  %v280_v58 = vmul.f32 %v849_v51, %v849_v51  ;;  %v288_v62 = vmul.f32 %v857_v55, %v857_v55 }
 0x127   :  { %314 = vadd.xlane.f32.xlu1 %v287_v43  ;;  %308 = vadd.xlane.f32.xlu0 %v284_v44  ;;  %v283_v53 = vmul.f32 %v843_v48, %v843_v48  ;;  %v291_v63 = vmul.f32 %v867_v60, %v867_v60 }
 0x128   :  { %v281_v57 = vmul.f32 %v851_v52, %v851_v52  ;;  %v289_v61 = vmul.f32 %v859_v56, %v859_v56 }
 0x12b   :  { %310 = vadd.xlane.f32.xlu1 %v285_v49  ;;  %294 = vadd.xlane.f32.xlu0 %v277_v50 }
 0x12f   :  { %306 = vadd.xlane.f32.xlu1 %v283_v53  ;;  %304 = vadd.xlane.f32.xlu0 %v282_v54 }
 0x133   :  { %302 = vadd.xlane.f32.xlu1 %v281_v57  ;;  %300 = vadd.xlane.f32.xlu0 %v280_v58 }
 0x137   :  { %318 = vadd.xlane.f32.xlu1 %v289_v61  ;;  %316 = vadd.xlane.f32.xlu0 %v288_v62 }
 0x13b   :  { %322 = vadd.xlane.f32.xlu1 %v291_v63  ;;  %320 = vadd.xlane.f32.xlu0 %v290_v0 }
 0x1ac   :  { %v313_v1 = vpop.xlane.xlu0 %312  ;;  %v297_v2 = vpop.xlane.xlu1 %296 }
 0x1ad   :  { %v326_v3 = vadd.f32 1e-12, %v297_v2  ;;  %v334_v6 = vadd.f32 1e-12, %v313_v1 }
 0x1af   :  { %651 = vrsqrt.f32 %v326_v3 }
 0x1b0   :  { %v299_v4 = vpop.xlane.xlu1 %298  ;;  %v293_v5 = vpop.xlane.xlu0 %292 }
 0x1b1   :  { %v327_v7 = vadd.f32 1e-12, %v299_v4  ;;  %v324_v12 = vadd.f32 1e-12, %v293_v5 }
 0x1b3   :  { %653 = vrsqrt.f32 %v327_v7 }
 0x1b4   :  { %v315_v8 = vpop.xlane.xlu1 %314  ;;  %v309_v9 = vpop.xlane.xlu0 %308  ;;  %655 = vrsqrt.f32 %v334_v6 }
 0x1b5   :  { %v335_v10 = vadd.f32 1e-12, %v315_v8  ;;  %v332_v11 = vadd.f32 1e-12, %v309_v9 }
 0x1b7   :  { %657 = vrsqrt.f32 %v335_v10 }
 0x1b8   :  { %v311_v13 = vpop.xlane.xlu1 %310  ;;  %v295_v14 = vpop.xlane.xlu0 %294  ;;  %659 = vrsqrt.f32 %v332_v11 }
 0x1b9   :  { %v333_v15 = vadd.f32 1e-12, %v311_v13  ;;  %v325_v16 = vadd.f32 1e-12, %v295_v14  ;;  %661 = vrsqrt.f32 %v324_v12  ;;  %v652_v17 = vpop.eup %651 }
 0x1ba   :  { %v358_v27 = vmul.f32 %v652_v17, %v813_v19 }
 0x1bb   :  { %663 = vrsqrt.f32 %v333_v15 }
 0x1bc   :  { %665 = vrsqrt.f32 %v325_v16  ;;  %v307_v18 = vpop.xlane.xlu1 %306  ;;  %v305_v21 = vpop.xlane.xlu0 %304 }
 0x1bd   :  { %v654_v22 = vpop.eup %653  ;;  %v331_v23 = vadd.f32 1e-12, %v307_v18  ;;  %v330_v24 = vadd.f32 1e-12, %v305_v21 }
 0x1be   :  { %v359_v28 = vmul.f32 %v654_v22, %v819_v26  ;;  %v656_v29 = vpop.eup %655 }
 0x1bf   :  { %667 = vrsqrt.f32 %v331_v23  ;;  %v366_v38 = vmul.f32 %v656_v29, %v815_v20 }
 0x1c0   :  { %v527_v30 = vpack.c.bf16 %v359_v28, %v358_v27  ;;  %669 = vrsqrt.f32 %v330_v24  ;;  %v303_v33 = vpop.xlane.xlu1 %302  ;;  %v301_v34 = vpop.xlane.xlu0 %300 }
 0x1c1   :  { %v658_v35 = vpop.eup %657  ;;  %v329_v36 = vadd.f32 1e-12, %v303_v33  ;;  %v328_v37 = vadd.f32 1e-12, %v301_v34 }
 0x1c2   :  { %559 = vst [vmem:[#allocation7 + $0x8] sm:$0xff] %v527_v30   ;;  %v367_v39 = vmul.f32 %v658_v35, %v827_v32  ;;  %v660_v40 = vpop.eup %659 }
 0x1c3   :  { %671 = vrsqrt.f32 %v329_v36  ;;  %v662_v43 = vpop.eup %661  ;;  %v364_v53 = vmul.f32 %v660_v40, %v825_v31 }
 0x1c4   :  { %v547_v19 = vpack.c.bf16 %v367_v39, %v366_v38  ;;  %673 = vrsqrt.f32 %v328_v37  ;;  %v319_v26 = vpop.xlane.xlu1 %318  ;;  %v317_v44 = vpop.xlane.xlu0 %316  ;;  %v356_v20 = vmul.f32 %v662_v43, %v817_v25 }
 0x1c5   :  { %v664_v45 = vpop.eup %663  ;;  %v337_v46 = vadd.f32 1e-12, %v319_v26  ;;  %v336_v49 = vadd.f32 1e-12, %v317_v44 }
 0x1c6   :  { %v666_v50 = vpop.eup %665  ;;  %563 = vst [vmem:[#allocation7 + $0x28] sm:$0xff] %v547_v19   ;;  %v365_v54 = vmul.f32 %v664_v45, %v835_v42 }
 0x1c7   :  { %v357_v32 = vmul.f32 %v666_v50, %v833_v41  ;;  %675 = vrsqrt.f32 %v337_v46 }
 0x1c8   :  { %v542_v57 = vpack.c.bf16 %v365_v54, %v364_v53  ;;  %677 = vrsqrt.f32 %v336_v49  ;;  %v323_v58 = vpop.xlane.xlu1 %322  ;;  %v321_v61 = vpop.xlane.xlu0 %320 }
 0x1c9   :  { %v668_v62 = vpop.eup %667  ;;  %v522_v63 = vpack.c.bf16 %v357_v32, %v356_v20  ;;  %v339_v0 = vadd.f32 1e-12, %v323_v58  ;;  %v338_v1 = vadd.f32 1e-12, %v321_v61 }
 0x1ca   :  { %v670_v2 = vpop.eup %669  ;;  %562 = vst [vmem:[#allocation7 + $0x20] sm:$0xff] %v542_v57   ;;  %v363_v3 = vmul.f32 %v668_v62, %v843_v48 }
 0x1cb   :  { %523 = vst [vmem:[#allocation7] sm:$0xff] %v522_v63   ;;  %v362_v31 = vmul.f32 %v670_v2, %v841_v47  ;;  %679 = vrsqrt.f32 %v339_v0 }
 0x1cc   :  { %681 = vrsqrt.f32 %v338_v1 }
 0x1cd   :  { %v672_v25 = vpop.eup %671  ;;  %v537_v41 = vpack.c.bf16 %v363_v3, %v362_v31 }
 0x1ce   :  { %v674_v42 = vpop.eup %673  ;;  %v361_v4 = vmul.f32 %v672_v25, %v851_v52 }
 0x1cf   :  { %561 = vst [vmem:[#allocation7 + $0x18] sm:$0xff] %v537_v41   ;;  %v360_v5 = vmul.f32 %v674_v42, %v849_v51 }
 0x1d1   :  { %v676_v6 = vpop.eup %675  ;;  %v532_v7 = vpack.c.bf16 %v361_v4, %v360_v5 }
 0x1d2   :  { %v678_v8 = vpop.eup %677  ;;  %v369_v9 = vmul.f32 %v676_v6, %v859_v56 }
 0x1d3   :  { %560 = vst [vmem:[#allocation7 + $0x10] sm:$0xff] %v532_v7   ;;  %v368_v48 = vmul.f32 %v678_v8, %v857_v55 }
 0x1d5   :  { %v680_v10 = vpop.eup %679  ;;  %v552_v47 = vpack.c.bf16 %v369_v9, %v368_v48 }
 0x1d6   :  { %v682_v11 = vpop.eup %681  ;;  %v371_v12 = vmul.f32 %v680_v10, %v867_v60 }
 0x1d7   :  { %564 = vst [vmem:[#allocation7 + $0x30] sm:$0xff] %v552_v47   ;;  %v370_v52 = vmul.f32 %v682_v11, %v865_v59 }
 0x1d9   :  { %v557_v13 = vpack.c.bf16 %v371_v12, %v370_v52 }
 0x1db   :  { %565 = vst [vmem:[#allocation7 + $0x38] sm:$0xff] %v557_v13  }
 0x1dc   :  { %738 = shalt.err (!%p735_p6)
}
 0x1dd   :  { %s739_s15 = scalar_lea.hbm %s911_s3, 1024 }
 0x1de   :  { %p740_p7 = scmp.ne.s32.totalorder %s911_s3, %s739_s15  ;;  %p743_p8 = scmp.lt.u32.totalorder %s739_s15, %s911_s3 }
 0x1e0   :  { %p745_p9 = pnand %p743_p8, %p740_p7 }
 0x1e2   :  { %748 = shalt.err (!%p745_p9)
}
 0x1e3   :  { %463 = dma.vmem_to_hbm [thread:$0]  %s458_s11, 1024, %s911_s3, [#allocation4], %s756_s22, %s756_s22, %s757_s23  }
 0x1e4   :  { %753 = dma.done.wait [#allocation4], 1024  }
 0x1e5   :  { %754 = vsyncadd [#allocation4], 4294966272 }
 0x1e6   :  { %467 = vsyncpa [#allocation3], 1 }
 0x1e7   :  { %468 = vsyncpa [#allocation6], 1 }
 0x1e8   :  { %469 = vsyncpa [#allocation4], 1 }

</bundles_post_ra>
